<compile_context>
chip_gen: v5e
topology: v5e:2x2
jax: 0.10.0
libtpu: 0.0.40
codegen_flags: <defaults>
</compile_context>

<pallas_src>
import jax
import jax.numpy as jnp
from jax.experimental import pallas as pl
from jax.experimental.pallas import tpu as pltpu

LANE = 128


def _add_bias_kernel(x_ref, b_ref, o_ref):
    # b_ref is a (1, tc) per-lane bias row; jnp broadcasting handles the add,
    # promoting to the output dtype if x and bias dtypes differ.
    o_ref[...] = (x_ref[...] + b_ref[...]).astype(o_ref.dtype)


def _sublane_multiple(dtype):
    """Minimum row-tile multiple for a dtype (sub-32-bit packs along sublanes)."""
    itemsize = jnp.dtype(dtype).itemsize
    if itemsize >= 4:
        return 8
    if itemsize == 2:
        return 16
    return 32


def _vmem_limit_bytes():
    """Scoped-VMEM limit: half of physical VMEM, capped at 64 MiB.
    (v5e/v6e: 64 MiB of 128 MiB; v7x: 32 MiB of its 64 MiB per-TC VMEM.)"""
    cap = 64 * 1024 * 1024
    try:
        cap = int(getattr(pltpu.get_tpu_info(), "vmem_capacity_bytes", cap))
    except Exception:
        pass
    return int(min(cap // 2, 64 * 1024 * 1024))


def _fold_factor(rows, cols):
    """Fold g consecutive rows into lanes so the slab is lane-dense
    (g*cols a multiple of 128 and >= ~1024); the reshape stays a pure view."""
    if cols % LANE == 0 and cols >= 512:
        return 1
    best_aligned = None
    for g in range(1, min(rows, 2048) + 1):
        if rows % g:
            continue
        gc = g * cols
        if gc % LANE == 0:
            if best_aligned is None:
                best_aligned = g
            if gc >= 1024:
                return g
    return best_aligned if best_aligned is not None else 1


def _pick_tiles(rows, cols, itemsize, sub, per_buf_budget):
    """(row_tile, col_tile): per-buffer tiles sized against the VMEM budget,
    row tile a multiple of the dtype sublane count, column tile a multiple of
    128 (or full width), plus >= 2 grid steps for slabs worth pipelining."""
    per_buf_budget = max(per_buf_budget, sub * LANE * itemsize)

    # Column tile: full width if one sublane-group of rows fits the budget,
    # otherwise a 128-multiple lane tile (bounds VMEM for very wide slabs).
    if cols * sub * itemsize <= per_buf_budget:
        tc = cols
    else:
        tc = (per_buf_budget // (sub * itemsize)) // LANE * LANE
        tc = int(min(max(tc, LANE), 32768))

    # Row tile: as many sublane-multiples as fit the per-buffer budget.
    tb = per_buf_budget // (tc * itemsize)
    tb = max((tb // sub) * sub, sub)
    if tb >= rows:
        tb = rows                      # full-extent block (always legal)

    # Guarantee >= 2 grid steps for slabs big enough to care, so the steps
    # software-pipeline and shard across both TensorCores on v7x.
    slab_bytes = rows * cols * itemsize
    if pl.cdiv(rows, tb) * pl.cdiv(cols, tc) < 2 and slab_bytes > (2 << 20):
        if rows > sub:
            tb = ((rows + 1) // 2 + sub - 1) // sub * sub      # < rows
        elif cols > LANE:
            tc = ((cols + 1) // 2 + LANE - 1) // LANE * LANE   # < cols
    return tb, tc


def add_bias(x, bias):
    """Pallas-TPU forward of AddBias.

    x    : [B, C] or [B, C, H, W]
    bias : [C]  (the parameter before PyTorch's unsqueeze(1))
    Returns x + bias broadcast exactly like the PyTorch module, in the
    promoted dtype (same as PyTorch's type promotion for the add).
    """
    bias = bias.reshape(-1)
    C = bias.shape[0]
    out_dtype = jnp.result_type(x.dtype, bias.dtype)
    bias = bias.astype(out_dtype)

    if x.ndim == 2:
        B, Cx = x.shape
        assert Cx == C, "bias length must match x.shape[1]"
        rows, cols = B, C
        x2 = x
        brow = bias                                   # per-lane bias
    elif x.ndim == 4:
        B, Cx, H, W = x.shape
        assert Cx == C, "bias length must match x.shape[1]"
        rows, cols = B, C * H * W
        x2 = x.reshape(rows, cols)                    # contiguous view, no copy
        brow = jnp.repeat(bias, H * W)                # per-lane bias over C*H*W
    else:
        raise ValueError("AddBias supports 2-D or 4-D inputs")

    # Lane-densify narrow / misaligned feature dims: fold rows into lanes.
    g = _fold_factor(rows, cols)
    if g > 1:
        rows, cols = rows // g, cols * g
        x2 = x2.reshape(rows, cols)
        brow = jnp.tile(brow, g)
    brow = brow.reshape(1, cols)

    itemsize = max(jnp.dtype(x.dtype).itemsize, jnp.dtype(out_dtype).itemsize)
    sub = max(_sublane_multiple(x.dtype), _sublane_multiple(out_dtype))
    vmem_limit = _vmem_limit_bytes()
    # x + out tiles, each double-buffered -> ~4 live tiles; keep them inside
    # 3/4 of the scoped limit (headroom for the small double-buffered bias row).
    per_buf_budget = (vmem_limit * 3) // 4 // 4
    tb, tc = _pick_tiles(rows, cols, itemsize, sub, per_buf_budget)

    grid = (pl.cdiv(rows, tb), pl.cdiv(cols, tc))
    out2 = pl.pallas_call(
        _add_bias_kernel,
        out_shape=jax.ShapeDtypeStruct((rows, cols), out_dtype),
        grid_spec=pltpu.PrefetchScalarGridSpec(
            num_scalar_prefetch=0,
            grid=grid,
            in_specs=[
                pl.BlockSpec((tb, tc), lambda i, j: (i, j)),
                pl.BlockSpec((1, tc), lambda i, j: (0, j)),
            ],
            out_specs=pl.BlockSpec((tb, tc), lambda i, j: (i, j)),
        ),
        compiler_params=pltpu.CompilerParams(
            # Both axes are embarrassingly parallel: pipelined steps and
            # dual-TensorCore sharding on v7x.
            dimension_semantics=("parallel", "parallel"),
            vmem_limit_bytes=vmem_limit,
        ),
    )(x2, brow)
    # TODO(synk): optionally sweep pl.Buffered(3) pipeline_mode on the x spec
    # to hide DMA-issue latency by a few percent; left at default double
    # buffering to stay comfortably within v7x's scoped-VMEM budget.
    return out2.reshape(x.shape)


if __name__ == "__main__":
    key = jax.random.PRNGKey(0)
    k1, k2, k3, k4 = jax.random.split(key, 4)

    # ---- 4-D case (conv feature maps): x [B, C, H, W], bias [C] ----
    B, C, H, W = 2, 4, 16, 16
    x4 = jax.random.normal(k1, (B, C, H, W), jnp.float32)
    bias4 = jax.random.normal(k2, (C,), jnp.float32)
    y4 = add_bias(x4, bias4)
    jax.block_until_ready(y4)
    ref4 = x4 + bias4.reshape(1, C, 1, 1)
    assert y4.shape == x4.shape and y4.dtype == ref4.dtype
    assert jnp.allclose(y4, ref4, atol=1e-6, rtol=1e-6)

    # ---- 2-D case (e.g. logstd bias on action logits): x [B, C], bias [C] ----
    B2, C2 = 8, 128
    x2 = jax.random.normal(k3, (B2, C2), jnp.float32)
    bias2 = jnp.arange(C2, dtype=jnp.float32) * 0.01
    y2 = add_bias(x2, bias2)
    jax.block_until_ready(y2)
    ref2 = x2 + bias2.reshape(1, C2)
    assert y2.shape == x2.shape
    assert jnp.allclose(y2, ref2, atol=1e-6, rtol=1e-6)

    # ---- narrow 2-D case (exercises the row->lane folding path) ----
    B3, C3 = 64, 32
    x3 = jax.random.normal(k4, (B3, C3), jnp.float32)
    bias3 = jnp.arange(C3, dtype=jnp.float32) * 0.1 - 1.0
    y3 = add_bias(x3, bias3)
    jax.block_until_ready(y3)
    ref3 = x3 + bias3.reshape(1, C3)
    assert y3.shape == x3.shape
    assert jnp.allclose(y3, ref3, atol=1e-6, rtol=1e-6)

    print("KERNEL_OK")
</pallas_src>

<mosaic_0001>
module attributes {stable_mosaic.version = 11 : i64} {
  func.func @_add_bias_kernel(%arg0: i32, %arg1: i32, %arg2: memref<2x1024xf32, #tpu.memory_space<vmem>>, %arg3: memref<1x1024xf32, #tpu.memory_space<vmem>>, %arg4: memref<2x1024xf32, #tpu.memory_space<vmem>>) attributes {dimension_semantics = [#tpu.dimension_semantics<parallel>, #tpu.dimension_semantics<parallel>], iteration_bounds = array<i64: 1, 1>, scalar_prefetch = 0 : i64, scratch_operands = 0 : i64, tpu.core_type = #tpu.core_type<tc>, window_params = [{transform_indices = @transform_0, window_bounds = array<i64: 2, 1024>}, {transform_indices = @transform_1, window_bounds = array<i64: 1, 1024>}, {transform_indices = @transform_2, window_bounds = array<i64: 2, 1024>}]} {
    %c0 = arith.constant 0 : index
    %c0_0 = arith.constant 0 : index
    %0 = vector.load %arg2[%c0, %c0_0] : memref<2x1024xf32, #tpu.memory_space<vmem>>, vector<2x1024xf32>
    %c0_1 = arith.constant 0 : index
    %c0_2 = arith.constant 0 : index
    %1 = vector.load %arg3[%c0_1, %c0_2] : memref<1x1024xf32, #tpu.memory_space<vmem>>, vector<1x1024xf32>
    %2 = vector.broadcast %1 : vector<1x1024xf32> to vector<2x1024xf32>
    %3 = arith.addf %0, %2 : vector<2x1024xf32>
    %c0_3 = arith.constant 0 : index
    %c0_4 = arith.constant 0 : index
    %4 = vector.load %arg4[%c0_3, %c0_4] : memref<2x1024xf32, #tpu.memory_space<vmem>>, vector<2x1024xf32>
    tpu.vector_store %arg4[%c0_3, %c0_4], %3 {strides = array<i32>} : memref<2x1024xf32, #tpu.memory_space<vmem>>, vector<2x1024xf32>,
    return
  }
  func.func @transform_0(%arg0: i32, %arg1: i32) -> (i32, i32) {
    %c0_i32 = arith.constant 0 : i32
    return %arg0, %arg1 : i32, i32
  }
  func.func @transform_1(%arg0: i32, %arg1: i32) -> (i32, i32) {
    %c0_i32 = arith.constant 0 : i32
    %c0_i32_0 = arith.constant 0 : i32
    return %c0_i32, %arg1 : i32, i32
  }
  func.func @transform_2(%arg0: i32, %arg1: i32) -> (i32, i32) {
    %c0_i32 = arith.constant 0 : i32
    return %arg0, %arg1 : i32, i32
  }
}

</mosaic_0001>

<bundles_post_ra>
// kernel: tpu_custom_call.1
= control target key start
LH: loop header
LB: loop body
LE: loop exit
PB: predicated region body
PF: predicated region fallthrough
CT: control target
= control target key end

     0   :  { %7 = vsyncpa [#allocation3], 0  ;;  %s203_s0 = inlined_call_operand.hbm [shape: f32[2,1024], index: 0, kind: input, shape index: {}]   ;;  %s204_s1 = inlined_call_operand.hbm [shape: f32[1,1024], index: 1, kind: input, shape index: {}]   ;;  %s205_s2 = inlined_call_operand.hbm [shape: f32[2,1024], index: 2, kind: output, shape index: {}]  }
   0x1   :  { %8 = vsyncpa [#allocation6], 0 }
   0x2   :  { %9 = vsyncpa [#allocation4], 0  ;;  %s15_s11 = sshll.u32 %s203_s0, 4  ;;  %s172_s12 = smov [#allocation2]   ;;  %s16_s11 = int_to_ptr.hbm [resolvable:$true] %s15_s11 }
   0x3   :  { %s17_s13 = sshll.u32 %s172_s12, 4  ;;  %s26_s16 = sshll.u32 %s204_s1, 4  ;;  %s18_s13 = int_to_ptr.vmem [resolvable:$true] %s17_s13  ;;  %s27_s16 = int_to_ptr.hbm [resolvable:$true] %s26_s16 }
   0x4   :  { %20 = dma.hbm_to_vmem [thread:$0]  %s16_s11, 256, %s18_s13, [#allocation3]  }
   0x5   :  { %s173_s17 = smov [#allocation5]  }
   0x6   :  { %s28_s18 = sshll.u32 %s173_s17, 4  ;;  %s29_s18 = int_to_ptr.vmem [resolvable:$true] %s28_s18 }
   0x7   :  { %31 = dma.hbm_to_vmem [thread:$0]  %s27_s16, 128, %s29_s18, [#allocation6]  }
   0x8   :  { %166 = dma.done.wait [#allocation3], 256  }
   0x9   :  { %167 = vsyncadd [#allocation3], 4294967040 }
   0xa   :  { %168 = dma.done.wait [#allocation6], 128  }
   0xb   :  { %169 = vsyncadd [#allocation6], 4294967168  ;;  %v42_v0 = vld [vmem:[#allocation5] sm:$0xff]  ;;  %vm58_vm0 = vcmask 1041408   ;;  %vm60_vm1 = vcmask 1045508   ;;  %vm62_vm2 = vcmask 1043456  }
   0xc   :  { %v44_v1 = vperm.slane %v42_v0, 0  ;;  %v45_v2 = vperm.slane %v42_v0, 1  ;;  %v46_v3 = vperm.slane %v42_v0, 2  ;;  %v47_v4 = vperm.slane %v42_v0, 3  ;;  %v40_v12 = vld [vmem:[#allocation2] sm:$0xff]  ;;  %v41_v18 = vld [vmem:[#allocation2 + $0x8] sm:$0xff] }
   0xd   :  { %v48_v5 = vperm.slane %v42_v0, 4  ;;  %v49_v6 = vperm.slane %v42_v0, 5  ;;  %v50_v7 = vperm.slane %v42_v0, 6  ;;  %v51_v8 = vperm.slane %v42_v0, 7  ;;  %s174_s0 = smov [#allocation7]   ;;  %s80_s21 = sshll.u32 %s205_s2, 4  ;;  %s81_s21 = int_to_ptr.hbm [resolvable:$true] %s80_s21 }
   0xe   :  { %v52_v9 = vrot.slane %v45_v2, 6  ;;  %v53_v10 = vrot.slane %v46_v3, 4  ;;  %v54_v11 = vrot.slane %v47_v4, 2  ;;  %s78_s1 = sshll.u32 %s174_s0, 4  ;;  %s79_s1 = int_to_ptr.vmem [resolvable:$true] %s78_s1 }
   0xf   :  { %v55_v13 = vrot.slane %v49_v6, 6  ;;  %v56_v14 = vrot.slane %v50_v7, 4  ;;  %v57_v15 = vrot.slane %v51_v8, 2 }
  0x10   :  { %v59_v16 = vsel %vm58_vm0, %v44_v1, %v52_v9  ;;  %v61_v17 = vsel %vm60_vm1, %v53_v10, %v54_v11 }
  0x11   :  { %v63_v19 = vsel %vm62_vm2, %v59_v16, %v61_v17  ;;  %v64_v20 = vsel %vm58_vm0, %v48_v5, %v55_v13  ;;  %v65_v21 = vsel %vm60_vm1, %v56_v14, %v57_v15 }
  0x12   :  { %v69_v22 = vadd.f32 %v63_v19, %v40_v12  ;;  %v66_v23 = vsel %vm62_vm2, %v64_v20, %v65_v21 }
  0x13   :  { %v70_v24 = vadd.f32 %v66_v23, %v41_v18 }
  0x14   :  { %71 = vst [vmem:[#allocation7] sm:$0xff] %v69_v22 }
  0x15   :  { %72 = vst [vmem:[#allocation7 + $0x8] sm:$0xff] %v70_v24 }
  0x16   :  { %83 = dma.vmem_to_hbm [thread:$0]  %s79_s1, 256, %s81_s21, [#allocation4]  }
  0x17   :  { %170 = dma.done.wait [#allocation4], 256  }
  0x18   :  { %171 = vsyncadd [#allocation4], 4294967040 }
  0x19   :  { %88 = vsyncpa [#allocation3], 1 }
  0x1a   :  { %89 = vsyncpa [#allocation6], 1 }
  0x1b   :  { %90 = vsyncpa [#allocation4], 1 }

</bundles_post_ra>
